<compile_context>
chip_gen: v7x
topology: tpu7x:2x2x1
jax: 0.10.0
libtpu: 0.0.40
codegen_flags: <defaults>
</compile_context>

<pallas_src>
import functools

import jax
import jax.numpy as jnp
from jax import lax
from jax.experimental import pallas as pl
from jax.experimental.pallas import tpu as pltpu


_DEFAULT_BLOCK_BYTES = 4 * 1024 * 1024    # ~4 MiB HBM traffic per input block
_ACC_CAP_ELEMS = 1024 * 1024              # f32 accumulator tile capped at 4 MiB
_VMEM_LIMIT = 32 * 1024 * 1024            # fits v5e/v6e/v7x with room to spare

_ARBITRARY = getattr(pltpu, "ARBITRARY", "arbitrary")
_CORE_PARALLEL = getattr(pltpu, "CORE_PARALLEL", "parallel")


def _tensorcore_count():
    """2 on multi-TensorCore chips (v7x); 1 on v5e/v6e (and on any failure)."""
    try:
        dev = jax.devices()[0]
        if dev.platform != "tpu":
            return 1
        kind = str(getattr(dev, "device_kind", "")).lower()
        if "v7" in kind or "7x" in kind:
            return 2
        # TODO(synk): switch to pltpu.get_tpu_info() once it exposes a TC count.
        return 1
    except Exception:
        return 1


def _input_spec(shape, index_map, n_buffers):
    """BlockSpec with optional deeper pipelining (falls back if unsupported)."""
    if n_buffers is None:
        return pl.BlockSpec(shape, index_map)
    try:
        return pl.BlockSpec(shape, index_map, pipeline_mode=pl.Buffered(n_buffers))
    except (TypeError, AttributeError):
        return pl.BlockSpec(shape, index_map)


def _largest_divisor_leq(n, cap):
    cap = max(1, min(n, cap))
    for d in range(cap, 0, -1):
        if n % d == 0:
            return d
    return 1


def _spatial_tiling(hw, c, block_elems, acc_cap_elems=_ACC_CAP_ELEMS):
    """Lane tile: multiple of 128, or the full spatial extent if it fits."""
    lane_budget = min(block_elems, acc_cap_elems) // max(c, 1)
    max_lanes = max(128, (lane_budget // 128) * 128)
    if hw <= max_lanes:
        lane_tile, n_sp = hw, 1
    else:
        lane_tile = max_lanes
        n_sp = pl.cdiv(hw, lane_tile)
    ragged = (lane_tile * n_sp != hw)
    return lane_tile, n_sp, ragged


def _mse_fold(B, C):
    """Fold B*C rows so the sublane ('channel') axis is a full multiple of 8."""
    R = B * C
    for cand in (64, 56, 48, 40, 32, 24, 16, 8):
        if R % cand == 0:
            return R // cand, cand
    return B, C


def _refined_recip(s):
    # EUP approx reciprocal (free slot) + one Newton step -> ~full f32 precision.
    r = pl.reciprocal(s, approx=True)
    return r * (2.0 - s * r)


# ---------------------------------------------------------------------------
# Pointwise losses: mse / softmax_mse / softmax_kl  (reduction='mean')
# ---------------------------------------------------------------------------
def _pointwise_kernel(x_ref, y_ref, out_ref, acc_ref, *,
                      mode, hw, lane_tile, ragged):
    b = pl.program_id(1)
    j = pl.program_id(2)

    @pl.when(jnp.logical_and(b == 0, j == 0))
    def _():
        acc_ref[...] = jnp.zeros_like(acc_ref)

    x = x_ref[...].astype(jnp.float32)           # (BT, C, LT)
    y = y_ref[...].astype(jnp.float32)

    if mode == "mse":
        d = x - y
        contrib = d * d
    elif mode == "softmax_mse":
        # softmax via exp + reciprocal: one exp per element per input (was two).
        ex = jnp.exp(x - jnp.max(x, axis=1, keepdims=True))
        ey = jnp.exp(y - jnp.max(y, axis=1, keepdims=True))
        px = ex * _refined_recip(jnp.sum(ex, axis=1, keepdims=True))
        py = ey * _refined_recip(jnp.sum(ey, axis=1, keepdims=True))
        d = px - py
        contrib = d * d
    elif mode == "softmax_kl":
        mx = jnp.max(x, axis=1, keepdims=True)
        my = jnp.max(y, axis=1, keepdims=True)
        ex = jnp.exp(x - mx)
        ey = jnp.exp(y - my)
        sx = jnp.sum(ex, axis=1, keepdims=True)
        sy = jnp.sum(ey, axis=1, keepdims=True)
        py = ey * _refined_recip(sy)
        # log_softmax(y) - log_softmax(x); logs only on the (BT,1,LT) row sums.
        delta = (y - my) - (x - mx) + (jnp.log(sx) - jnp.log(sy))
        contrib = py * delta
    else:
        raise NotImplementedError(mode)

    # Elementwise accumulation (pure VPU adds) into a block-shaped scratch.
    contrib_sum = jnp.sum(contrib, axis=0)       # (C, LT)

    if ragged:
        last = pl.num_programs(2) - 1
        # Only the last spatial tile can be ragged: the iota/compare/select runs
        # there only.  OOB padding garbage (even NaN/Inf) is confined to fully
        # masked lane columns (all reductions above are per-column over the
        # channel axis) and is discarded by this select.
        @pl.when(j == last)
        def _():
            col = j * lane_tile + lax.broadcasted_iota(jnp.int32,
                                                       contrib_sum.shape, 1)
            acc_ref[...] += jnp.where(col < hw, contrib_sum, 0.0)

        @pl.when(j != last)
        def _():
            acc_ref[...] += contrib_sum
    else:
        acc_ref[...] += contrib_sum

    # Full cross-lane reduce + scalar store only once per shard (last step).
    @pl.when(jnp.logical_and(b == pl.num_programs(1) - 1,
                             j == pl.num_programs(2) - 1))
    def _():
        out_ref[...] = jnp.sum(acc_ref[...], keepdims=True)[None]   # (1, 1, 1)


def pointwise_loss_pallas(x, y, mode, block_bytes=_DEFAULT_BLOCK_BYTES):
    """softmax_mse / softmax_kl / mse loss with 'mean' reduction (scalar)."""
    assert x.shape == y.shape and x.ndim == 4
    B, C, H, W = x.shape
    count = B * C * H * W                        # torch 'mean' over all elements
    HW = H * W

    # Plain MSE has no channel coupling: fold B*C rows onto the sublane axis so
    # small-C inputs get full (8,128) vreg tiles.  Softmax modes keep the real
    # channel axis on sublanes (reduction axis).
    if mode == "mse":
        Bf, Cf = _mse_fold(B, C)
    else:
        Bf, Cf = B, C
    xr = x.reshape(Bf, Cf, HW)                   # free reshape (contiguous dims)
    yr = y.reshape(Bf, Cf, HW)

    block_elems = max(8 * 128, block_bytes // jnp.dtype(x.dtype).itemsize)
    lane_tile, n_sp, ragged = _spatial_tiling(HW, Cf, block_elems)

    n_cores = _tensorcore_count()
    # Shard the batch across TensorCores only when there is more than one TC
    # (v7x); on 1-TC chips the extra axis would just shrink b_tile.
    n_shards = 2 if (n_cores >= 2 and Bf % 2 == 0 and Bf >= 2) else 1
    bs = Bf // n_shards
    b_tile = _largest_divisor_leq(bs, max(1, block_elems // (Cf * lane_tile)))
    nb = bs // b_tile

    # Deeper input buffering only where the DMA engine is fast enough to
    # benefit (v7x); default double-buffering elsewhere.
    n_buf = 3 if n_cores >= 2 else None
    in_map = lambda s, b, j: (s * nb + b, 0, j)
    in_specs = [_input_spec((b_tile, Cf, lane_tile), in_map, n_buf),
                _input_spec((b_tile, Cf, lane_tile), in_map, n_buf)]

    if n_shards > 1:
        dims = (_CORE_PARALLEL, _ARBITRARY, _ARBITRARY)
    else:
        dims = ("arbitrary", "arbitrary", "arbitrary")

    out = pl.pallas_call(
        functools.partial(_pointwise_kernel, mode=mode, hw=HW,
                          lane_tile=lane_tile, ragged=ragged),
        out_shape=jax.ShapeDtypeStruct((n_shards, 1, 1), jnp.float32),
        grid=(n_shards, nb, n_sp),
        in_specs=in_specs,
        out_specs=pl.BlockSpec((1, 1, 1), lambda s, b, j: (s, 0, 0)),
        scratch_shapes=[pltpu.VMEM((Cf, lane_tile), jnp.float32)],
        compiler_params=pltpu.CompilerParams(
            dimension_semantics=dims,
            vmem_limit_bytes=_VMEM_LIMIT),
    )(xr, yr)

    return jnp.sum(out) / count


# ---------------------------------------------------------------------------
# MMD loss: tiled adaptive_avg_pool2d -> (1,1), then MXU pairwise kernel
# ---------------------------------------------------------------------------
def _pool_mean_kernel(x_ref, o_ref, acc_ref, *, hw, lane_tile, ragged, inv_hw):
    j = pl.program_id(1)

    @pl.when(j == 0)
    def _():
        acc_ref[...] = jnp.zeros_like(acc_ref)

    x = x_ref[...].astype(jnp.float32)           # (BT, C, LT)

    if ragged:
        last = pl.num_programs(1) - 1
        @pl.when(j == last)
        def _():
            col = j * lane_tile + lax.broadcasted_iota(jnp.int32, x.shape, 2)
            acc_ref[...] += jnp.sum(jnp.where(col < hw, x, 0.0), axis=-1)

        @pl.when(j != last)
        def _():
            acc_ref[...] += jnp.sum(x, axis=-1)
    else:
        acc_ref[...] += jnp.sum(x, axis=-1)      # (BT, C)

    # Single (narrow) output store per batch tile instead of per-step RMW.
    @pl.when(j == pl.num_programs(1) - 1)
    def _():
        o_ref[...] = (acc_ref[...] * inv_hw)[None]    # (1, BT, C)


def _adaptive_avg_pool_pallas(x, block_bytes=_DEFAULT_BLOCK_BYTES):
    """adaptive_avg_pool2d(x, (1, 1)).squeeze() -> (B, C) float32."""
    B, C, H, W = x.shape
    HW = H * W
    xr = x.reshape(B, C, HW)
    block_elems = max(8 * 128, block_bytes // jnp.dtype(x.dtype).itemsize)
    lane_tile, n_sp, ragged = _spatial_tiling(HW, C, block_elems)
    b_tile = _largest_divisor_leq(B, max(1, block_elems // (C * lane_tile)))
    nb = B // b_tile

    pooled = pl.pallas_call(
        functools.partial(_pool_mean_kernel, hw=HW, lane_tile=lane_tile,
                          ragged=ragged, inv_hw=1.0 / HW),
        out_shape=jax.ShapeDtypeStruct((nb, b_tile, C), jnp.float32),
        grid=(nb, n_sp),
        in_specs=[pl.BlockSpec((b_tile, C, lane_tile),
                               lambda bi, j: (bi, 0, j))],
        out_specs=pl.BlockSpec((1, b_tile, C), lambda bi, j: (bi, 0, 0)),
        scratch_shapes=[pltpu.VMEM((b_tile, C), jnp.float32)],
        compiler_params=pltpu.CompilerParams(
            dimension_semantics=("parallel", "arbitrary"),
            vmem_limit_bytes=_VMEM_LIMIT),
    )(xr)
    return pooled.reshape(B, C)


def _mmd_pair_kernel(xp_ref, yp_ref, o_ref, *, dim):
    xp = xp_ref[...]                             # (Bx, C) f32
    yp = yp_ref[...]                             # (By, C) f32
    inv_d = 1.0 / dim
    ones_c = jnp.ones((1, dim), jnp.float32)

    def kernel_mean(a, b):
        # mean_c (a_i - b_j)^2 = (||a_i||^2 + ||b_j||^2 - 2 a_i.b_j) / C
        aa = jnp.sum(a * a, axis=-1, keepdims=True)                    # (Ba, 1)
        # Row-norms of b in lane orientation.  A ones-matvec on the MXU avoids a
        # sublane->lane relayout of a reduce result; cost is negligible at these
        # sizes (review: switch to a plain reduce only if B, C grow very large).
        bb = lax.dot_general(ones_c, b * b, (((1,), (1,)), ((), ())),
                             preferred_element_type=jnp.float32)       # (1, Bb)
        ab = lax.dot_general(a, b, (((1,), (1,)), ((), ())),
                             preferred_element_type=jnp.float32)       # (Ba, Bb) MXU
        # Clamp: Gram-identity cancellation can make nearly-equal rows (e.g. the
        # diagonal, which must be exp(0)=1) come out slightly negative in f32.
        sq = jnp.maximum((aa + bb - 2.0 * ab) * inv_d, 0.0)
        return jnp.mean(jnp.exp(-sq), keepdims=True)                   # (1, 1)

    o_ref[...] = (kernel_mean(xp, xp) + kernel_mean(yp, yp)
                  - 2.0 * kernel_mean(xp, yp))


def mmd_loss_pallas(x, y):
    assert x.ndim == 4 and y.ndim == 4 and x.shape[1] == y.shape[1]
    xp = _adaptive_avg_pool_pallas(x)            # (Bx, C)
    yp = _adaptive_avg_pool_pallas(y)            # (By, C)
    Bx, C = xp.shape
    By = yp.shape[0]
    # VMEM size guard (v7x has only 64 MiB physical VMEM).
    # TODO(synk): tile the pair stage over Bx rows if this ever trips.
    pair_bytes = 4 * ((Bx + By) * C + Bx * Bx + By * By + Bx * By)
    assert pair_bytes < 24 * 1024 * 1024, pair_bytes

    out = pl.pallas_call(
        functools.partial(_mmd_pair_kernel, dim=C),
        out_shape=jax.ShapeDtypeStruct((1, 1), jnp.float32),
        compiler_params=pltpu.CompilerParams(vmem_limit_bytes=_VMEM_LIMIT),
    )(xp, yp)
    return out[0, 0]


# ---------------------------------------------------------------------------
# Distribution_Loss equivalent
# ---------------------------------------------------------------------------
class DistributionLoss:
    """JAX/Pallas port of Distribution_Loss (no learnable parameters)."""

    def __init__(self, loss="softmax_mse", reduction="mean"):
        loss = loss.lower()
        if loss not in ("mse", "softmax_mse", "softmax_kl", "mmd"):
            # TODO(synk): raw 'kl' (F.kl_div on unnormalized inputs) not implemented.
            raise NotImplementedError(loss)
        self.loss_name = loss
        self.reduction = reduction
        self.check_shape = loss != "mmd"

    def __call__(self, input_logits, target_logits, mask=None, reduction=None):
        if self.check_shape:
            assert input_logits.shape == target_logits.shape
        if reduction is None:
            reduction = self.reduction
        if reduction != "mean":
            # TODO(synk): only 'mean' reduction is supported (scalar loss), so the
            # masked / per-sample branch of forward() is never taken.
            raise NotImplementedError(reduction)

        if self.loss_name == "mmd":
            loss = mmd_loss_pallas(input_logits, target_logits)
        else:
            loss = pointwise_loss_pallas(input_logits, target_logits,
                                         self.loss_name)

        if "softmax" not in self.loss_name and "mmd" not in self.loss_name:
            loss = loss / 10000.0
        # loss is a 0-d scalar -> the len(loss.shape) > 1 branch never triggers.
        return loss


# ---------------------------------------------------------------------------
# Pure-JAX references (for correctness checks only)
# ---------------------------------------------------------------------------
def _ref_softmax_mse(x, y):
    return jnp.mean((jax.nn.softmax(x, axis=1) - jax.nn.softmax(y, axis=1)) ** 2)


def _ref_softmax_kl(x, y):
    lsx = jax.nn.log_softmax(x, axis=1)
    lsy = jax.nn.log_softmax(y, axis=1)
    return jnp.mean(jnp.exp(lsy) * (lsy - lsx))


def _ref_mse(x, y):
    return jnp.mean((x - y) ** 2) / 10000.0


def _ref_mmd(x, y):
    xp = jnp.mean(x, axis=(2, 3))
    yp = jnp.mean(y, axis=(2, 3))

    def k(a, b):
        d = a[:, None, :] - b[None, :, :]
        return jnp.exp(-jnp.mean(d * d, axis=-1))

    return jnp.mean(k(xp, xp)) + jnp.mean(k(yp, yp)) - 2.0 * jnp.mean(k(xp, yp))


if __name__ == "__main__":
    key = jax.random.PRNGKey(0)
    k1, k2, k3, k4, k5, k6, k7, k8 = jax.random.split(key, 8)

    # Base case: NCHW logits, batch=2, channels=4, spatial=16x16.
    x = jax.random.normal(k1, (2, 4, 16, 16), jnp.float32)
    y = jax.random.normal(k2, (2, 4, 16, 16), jnp.float32)

    checks = [
        ("softmax_mse", _ref_softmax_mse, 1e-5, 1e-6),
        ("softmax_kl", _ref_softmax_kl, 1e-5, 1e-6),
        ("mse", _ref_mse, 1e-5, 1e-7),
        ("mmd", _ref_mmd, 5e-2, 5e-4),   # pairwise stage runs on the MXU
    ]
    for name, ref_fn, rtol, atol in checks:
        mod = DistributionLoss(loss=name, reduction="mean")
        out = jax.block_until_ready(mod(x, y))
        ref = ref_fn(x, y)
        assert jnp.allclose(out, ref, rtol=rtol, atol=atol), (
            name, float(out), float(ref))

    # Ragged spatial tail + multi-tile grid (tiny block budget on purpose).
    xr_ = jax.random.normal(k3, (2, 4, 15, 20), jnp.float32)
    yr_ = jax.random.normal(k4, (2, 4, 15, 20), jnp.float32)
    out = jax.block_until_ready(
        pointwise_loss_pallas(xr_, yr_, "softmax_kl", block_bytes=4096))
    ref = _ref_softmax_kl(xr_, yr_)
    assert jnp.allclose(out, ref, rtol=1e-5, atol=1e-6), (float(out), float(ref))

    # Odd batch -> single-shard path; batch tile > 1.
    xo = jax.random.normal(k5, (3, 4, 8, 8), jnp.float32)
    yo = jax.random.normal(k6, (3, 4, 8, 8), jnp.float32)
    mod = DistributionLoss(loss="softmax_mse")
    out = jax.block_until_ready(mod(xo, yo))
    ref = _ref_softmax_mse(xo, yo)
    assert jnp.allclose(out, ref, rtol=1e-5, atol=1e-6), (float(out), float(ref))

    # MMD with differently-shaped inputs (allowed: check_shape=False for mmd).
    xm = jax.random.normal(k7, (16, 32, 4, 4), jnp.float32)
    ym = jax.random.normal(k8, (12, 32, 5, 5), jnp.float32)
    mod = DistributionLoss(loss="mmd")
    out = jax.block_until_ready(mod(xm, ym))
    ref = _ref_mmd(xm, ym)
    assert jnp.allclose(out, ref, rtol=5e-2, atol=5e-4), (float(out), float(ref))

    print("KERNEL_OK")
</pallas_src>

<mosaic_0001>
module attributes {stable_mosaic.version = 11 : i64} {
  func.func @_pointwise_kernel(%arg0: i32, %arg1: i32, %arg2: i32, %arg3: memref<2x4x256xf32, #tpu.memory_space<vmem>>, %arg4: memref<2x4x256xf32, #tpu.memory_space<vmem>>, %arg5: memref<1x1x1xf32, #tpu.memory_space<vmem>>, %arg6: memref<4x256xf32, #tpu.memory_space<vmem>>) attributes {dimension_semantics = [#tpu.dimension_semantics<arbitrary>, #tpu.dimension_semantics<arbitrary>, #tpu.dimension_semantics<arbitrary>], iteration_bounds = array<i64: 1, 1, 1>, scalar_prefetch = 0 : i64, scratch_operands = 1 : i64, tpu.core_type = #tpu.core_type<tc>, window_params = [{transform_indices = @transform_0, window_bounds = array<i64: 2, 4, 256>}, {transform_indices = @transform_1, window_bounds = array<i64: 2, 4, 256>}, {transform_indices = @transform_2, window_bounds = array<i64: 1, 1, 1>}]} {
    %c0_i32 = arith.constant 0 : i32
    %0 = arith.cmpi eq, %arg1, %c0_i32 : i32
    %c0_i32_0 = arith.constant 0 : i32
    %1 = arith.cmpi eq, %arg2, %c0_i32_0 : i32
    %2 = arith.andi %0, %1 : i1
    %3 = arith.extui %2 : i1 to i32
    %c0_i32_1 = arith.constant 0 : i32
    %4 = arith.cmpi ne, %3, %c0_i32_1 : i32
    scf.if %4 {
      %cst_20 = arith.constant 0.000000e+00 : f32
      %46 = vector.broadcast %cst_20 : f32 to vector<4x256xf32>
      %c0_21 = arith.constant 0 : index
      %c0_22 = arith.constant 0 : index
      %47 = vector.load %arg6[%c0_21, %c0_22] : memref<4x256xf32, #tpu.memory_space<vmem>>, vector<4x256xf32>
      tpu.vector_store %arg6[%c0_21, %c0_22], %46 {strides = array<i32>} : memref<4x256xf32, #tpu.memory_space<vmem>>, vector<4x256xf32>,
    } else {
    }
    %c0 = arith.constant 0 : index
    %c0_2 = arith.constant 0 : index
    %c0_3 = arith.constant 0 : index
    %5 = vector.load %arg3[%c0, %c0_2, %c0_3] : memref<2x4x256xf32, #tpu.memory_space<vmem>>, vector<2x4x256xf32>
    %c0_4 = arith.constant 0 : index
    %c0_5 = arith.constant 0 : index
    %c0_6 = arith.constant 0 : index
    %6 = vector.load %arg4[%c0_4, %c0_5, %c0_6] : memref<2x4x256xf32, #tpu.memory_space<vmem>>, vector<2x4x256xf32>
    %cst = arith.constant dense<0xFF800000> : vector<2x256xf32>
    %7 = vector.multi_reduction <maximumf>, %5, %cst [1] : vector<2x4x256xf32> to vector<2x256xf32>
    %8 = vector.shape_cast %7 : vector<2x256xf32> to vector<2x1x256xf32>
    %9 = vector.broadcast %8 : vector<2x1x256xf32> to vector<2x4x256xf32>
    %10 = arith.subf %5, %9 : vector<2x4x256xf32>
    %11 = math.exp %10 : vector<2x4x256xf32>
    %cst_7 = arith.constant dense<0xFF800000> : vector<2x256xf32>
    %12 = vector.multi_reduction <maximumf>, %6, %cst_7 [1] : vector<2x4x256xf32> to vector<2x256xf32>
    %13 = vector.shape_cast %12 : vector<2x256xf32> to vector<2x1x256xf32>
    %14 = vector.broadcast %13 : vector<2x1x256xf32> to vector<2x4x256xf32>
    %15 = arith.subf %6, %14 : vector<2x4x256xf32>
    %16 = math.exp %15 : vector<2x4x256xf32>
    %cst_8 = arith.constant dense<0.000000e+00> : vector<2x256xf32>
    %17 = vector.multi_reduction <add>, %11, %cst_8 [1] : vector<2x4x256xf32> to vector<2x256xf32>
    %18 = vector.shape_cast %17 : vector<2x256xf32> to vector<2x1x256xf32>
    %19 = tpu.reciprocal %18 {approx = true} : vector<2x1x256xf32> -> vector<2x1x256xf32>
    %20 = arith.mulf %18, %19 : vector<2x1x256xf32>
    %cst_9 = arith.constant 2.000000e+00 : f32
    %21 = vector.broadcast %cst_9 : f32 to vector<2x1x256xf32>
    %22 = arith.subf %21, %20 : vector<2x1x256xf32>
    %23 = arith.mulf %19, %22 : vector<2x1x256xf32>
    %24 = vector.broadcast %23 : vector<2x1x256xf32> to vector<2x4x256xf32>
    %25 = arith.mulf %11, %24 : vector<2x4x256xf32>
    %cst_10 = arith.constant dense<0.000000e+00> : vector<2x256xf32>
    %26 = vector.multi_reduction <add>, %16, %cst_10 [1] : vector<2x4x256xf32> to vector<2x256xf32>
    %27 = vector.shape_cast %26 : vector<2x256xf32> to vector<2x1x256xf32>
    %28 = tpu.reciprocal %27 {approx = true} : vector<2x1x256xf32> -> vector<2x1x256xf32>
    %29 = arith.mulf %27, %28 : vector<2x1x256xf32>
    %cst_11 = arith.constant 2.000000e+00 : f32
    %30 = vector.broadcast %cst_11 : f32 to vector<2x1x256xf32>
    %31 = arith.subf %30, %29 : vector<2x1x256xf32>
    %32 = arith.mulf %28, %31 : vector<2x1x256xf32>
    %33 = vector.broadcast %32 : vector<2x1x256xf32> to vector<2x4x256xf32>
    %34 = arith.mulf %16, %33 : vector<2x4x256xf32>
    %35 = arith.subf %25, %34 : vector<2x4x256xf32>
    %36 = arith.mulf %35, %35 : vector<2x4x256xf32>
    %cst_12 = arith.constant dense<0.000000e+00> : vector<4x256xf32>
    %37 = vector.multi_reduction <add>, %36, %cst_12 [0] : vector<2x4x256xf32> to vector<4x256xf32>
    %c0_13 = arith.constant 0 : index
    %c0_14 = arith.constant 0 : index
    %38 = vector.load %arg6[%c0_13, %c0_14] : memref<4x256xf32, #tpu.memory_space<vmem>>, vector<4x256xf32>
    %39 = arith.addf %38, %37 : vector<4x256xf32>
    %c0_15 = arith.constant 0 : index
    %c0_16 = arith.constant 0 : index
    %40 = vector.load %arg6[%c0_15, %c0_16] : memref<4x256xf32, #tpu.memory_space<vmem>>, vector<4x256xf32>
    tpu.vector_store %arg6[%c0_15, %c0_16], %39 {strides = array<i32>} : memref<4x256xf32, #tpu.memory_space<vmem>>, vector<4x256xf32>,
    %c0_i32_17 = arith.constant 0 : i32
    %41 = arith.cmpi eq, %arg1, %c0_i32_17 : i32
    %c0_i32_18 = arith.constant 0 : i32
    %42 = arith.cmpi eq, %arg2, %c0_i32_18 : i32
    %43 = arith.andi %41, %42 : i1
    %44 = arith.extui %43 : i1 to i32
    %c0_i32_19 = arith.constant 0 : i32
    %45 = arith.cmpi ne, %44, %c0_i32_19 : i32
    scf.if %45 {
      %c0_20 = arith.constant 0 : index
      %c0_21 = arith.constant 0 : index
      %46 = vector.load %arg6[%c0_20, %c0_21] : memref<4x256xf32, #tpu.memory_space<vmem>>, vector<4x256xf32>
      %47 = vector.shape_cast %46 : vector<4x256xf32> to vector<1x4x256xf32>
      %cst_22 = arith.constant dense<0.000000e+00> : vector<1xf32>
      %48 = vector.multi_reduction <add>, %47, %cst_22 [1, 2] : vector<1x4x256xf32> to vector<1xf32>
      %49 = vector.shape_cast %48 : vector<1xf32> to vector<1x1x1xf32>
      %50 = vector.extract %49[0, 0, 0] : f32 from vector<1x1x1xf32>
      %51 = vector.broadcast %50 : f32 to vector<1x1xf32>
      %52 = vector.shape_cast %51 : vector<1x1xf32> to vector<1x1x1xf32>
      %c0_23 = arith.constant 0 : index
      %c0_24 = arith.constant 0 : index
      %c0_25 = arith.constant 0 : index
      %53 = vector.load %arg5[%c0_23, %c0_24, %c0_25] : memref<1x1x1xf32, #tpu.memory_space<vmem>>, vector<1x1x1xf32>
      tpu.vector_store %arg5[%c0_23, %c0_24, %c0_25], %52 {strides = array<i32>} : memref<1x1x1xf32, #tpu.memory_space<vmem>>, vector<1x1x1xf32>,
    } else {
    }
    return
  }
  func.func @transform_0(%arg0: i32, %arg1: i32, %arg2: i32) -> (i32, i32, i32) {
    %c1_i32 = arith.constant 1 : i32
    %0 = arith.muli %arg0, %c1_i32 : i32
    %1 = arith.addi %0, %arg1 : i32
    %c0_i32 = arith.constant 0 : i32
    %c0_i32_0 = arith.constant 0 : i32
    return %1, %c0_i32, %arg2 : i32, i32, i32
  }
  func.func @transform_1(%arg0: i32, %arg1: i32, %arg2: i32) -> (i32, i32, i32) {
    %c1_i32 = arith.constant 1 : i32
    %0 = arith.muli %arg0, %c1_i32 : i32
    %1 = arith.addi %0, %arg1 : i32
    %c0_i32 = arith.constant 0 : i32
    %c0_i32_0 = arith.constant 0 : i32
    return %1, %c0_i32, %arg2 : i32, i32, i32
  }
  func.func @transform_2(%arg0: i32, %arg1: i32, %arg2: i32) -> (i32, i32, i32) {
    %c0_i32 = arith.constant 0 : i32
    %c0_i32_0 = arith.constant 0 : i32
    %c0_i32_1 = arith.constant 0 : i32
    return %arg0, %c0_i32, %c0_i32_0 : i32, i32, i32
  }
}

</mosaic_0001>

<bundles_post_ra>
// kernel: tpu_custom_call.1
= control target key start
LH: loop header
LB: loop body
LE: loop exit
PB: predicated region body
PF: predicated region fallthrough
CT: control target
= control target key end

     0   :  { %7 = vsyncpa [#allocation4], 0  ;;  %s576_s0 = inlined_call_operand.hbm [shape: f32[2,4,256], index: 0, kind: input, shape index: {}]   ;;  %s577_s1 = inlined_call_operand.hbm [shape: f32[2,4,256], index: 1, kind: input, shape index: {}]   ;;  %s578_s2 = inlined_call_operand.hbm [shape: f32[1,1,1], index: 2, kind: output, shape index: {}]  }
   0x1   :  { %8 = vsyncpa [#allocation7], 0 }
   0x2   :  { %9 = vsyncpa [#allocation5], 0  ;;  %s450_s9 = smov [#allocation3]   ;;  %s378_s13 = scalar_lea.hbm %s576_s0, 256 }
   0x3   :  { %s20_s10 = sshll.u32 %s450_s9, 4  ;;  %p379_p0 = scmp.ne.s32.totalorder %s576_s0, %s378_s13  ;;  %s21_s10 = int_to_ptr.vmem [resolvable:$true] %s20_s10 }
   0x4   :  { %p382_p1 = scmp.lt.u32.totalorder %s378_s13, %s576_s0 }
   0x6   :  { %p384_p2 = pnand %p382_p1, %p379_p0 }
   0x8   :  { %387 = shalt.err (!%p384_p2)
}
   0x9   :  { %s388_s18 = scalar_lea.vmem %s21_s10, 256  ;;  %p393_p4 = scmp.lt.s32.totalorder %s21_s10, %s21_s10 }
   0xa   :  { %p389_p3 = scmp.ne.s32.totalorder %s21_s10, %s388_s18  ;;  %p394_p5 = scmp.lt.s32.totalorder %s388_s18, %s388_s18 }
   0xc   :  { %p395_p6 = por %p394_p5, %p393_p4 }
   0xe   :  { %p396_p7 = pnand %p395_p6, %p389_p3 }
  0x10   :  { %399 = shalt.err (!%p396_p7)
}
  0x11   :  { %s451_s19 = smov 128   ;;  %s452_s20 = smov 8  }
  0x12   :  { %26 = dma.hbm_to_vmem [thread:$0]  %s576_s0, 256, %s21_s10, [#allocation4], %s451_s19, %s451_s19, %s452_s20  }
  0x13   :  { %s453_s23 = smov [#allocation6]   ;;  %s400_s27 = scalar_lea.hbm %s577_s1, 256 }
  0x14   :  { %s37_s24 = sshll.u32 %s453_s23, 4  ;;  %p401_p8 = scmp.ne.s32.totalorder %s577_s1, %s400_s27  ;;  %s38_s24 = int_to_ptr.vmem [resolvable:$true] %s37_s24 }
  0x15   :  { %p404_p9 = scmp.lt.u32.totalorder %s400_s27, %s577_s1 }
  0x17   :  { %p406_p10 = pnand %p404_p9, %p401_p8 }
  0x19   :  { %409 = shalt.err (!%p406_p10)
}
  0x1a   :  { %s410_s4 = scalar_lea.vmem %s38_s24, 256  ;;  %p415_p12 = scmp.lt.s32.totalorder %s38_s24, %s38_s24 }
  0x1b   :  { %p411_p11 = scmp.ne.s32.totalorder %s38_s24, %s410_s4  ;;  %p416_p13 = scmp.lt.s32.totalorder %s410_s4, %s410_s4 }
  0x1d   :  { %p417_p0 = por %p416_p13, %p415_p12 }
  0x1f   :  { %p418_p1 = pnand %p417_p0, %p411_p11 }
  0x21   :  { %421 = shalt.err (!%p418_p1)
}
  0x22   :  { %43 = dma.hbm_to_vmem [thread:$0]  %s577_s1, 256, %s38_s24, [#allocation7], %s451_s19, %s451_s19, %s452_s20  }
  0x23   :  { %444 = dma.done.wait [#allocation4], 256  }
  0x24   :  { %445 = vsyncadd [#allocation4], 4294967040 }
  0x25   :  { %446 = dma.done.wait [#allocation7], 256  }
  0x26   :  { %447 = vsyncadd [#allocation7], 4294967040  ;;  %vm71_vm0 = vcmask 1043456   ;;  %v494_v0 = vld [vmem:[#allocation3] sm:$0xff]  ;;  %v496_v1 = vld [vmem:[#allocation3 + $0x8] sm:$0xff]  ;;  %s454_s1 = smov [#allocation8]  }
  0x27   :  { %v498_v2 = vld [vmem:[#allocation6] sm:$0xff]  ;;  %v500_v3 = vld [vmem:[#allocation6 + $0x8] sm:$0xff]  ;;  %v67_v4 = vcombine.high %v494_v0, %v494_v0  ;;  %v68_v5 = vcombine.high %v496_v1, %v496_v1  ;;  %v72_v6 = vsel %vm71_vm0, %v494_v0, -inf  ;;  %v86_v7 = vsel %vm71_vm0, %v496_v1, -inf  ;;  %s332_s6 = sshll.u32 %s454_s1, 4  ;;  %s333_s6 = int_to_ptr.vmem [resolvable:$true] %s332_s6 }
  0x28   :  { %v73_v8 = vrot.slane %v72_v6, 4  ;;  %v87_v9 = vrot.slane %v86_v7, 4  ;;  %v116_v10 = vcombine.high %v498_v2, %v498_v2  ;;  %v117_v11 = vcombine.high %v500_v3, %v500_v3  ;;  %s422_s8 = scalar_lea.vmem %s333_s6, 16  ;;  %s426_s9 = scalar_lea.vmem %s333_s6, 32 }
  0x29   :  { %v79_v12 = vsel %vm71_vm0, %v67_v4, -inf  ;;  %v93_v13 = vsel %vm71_vm0, %v68_v5, -inf  ;;  %v120_v14 = vsel %vm71_vm0, %v498_v2, -inf  ;;  %v134_v15 = vsel %vm71_vm0, %v500_v3, -inf  ;;  %p423_p2 = scmp.ne.s32.totalorder %s333_s6, %s422_s8  ;;  %p427_p3 = scmp.lt.s32.totalorder %s333_s6, %s333_s6 }
  0x2a   :  { %v74_v16 = vmax.f32 %v72_v6, %v73_v8  ;;  %v80_v17 = vrot.slane %v79_v12, 4  ;;  %v88_v18 = vmax.f32 %v86_v7, %v87_v9  ;;  %v94_v19 = vrot.slane %v93_v13, 4  ;;  %p428_p4 = scmp.lt.s32.totalorder %s426_s9, %s422_s8 }
  0x2b   :  { %v121_v20 = vrot.slane %v120_v14, 4  ;;  %v127_v21 = vsel %vm71_vm0, %v116_v10, -inf  ;;  %v135_v22 = vrot.slane %v134_v15, 4  ;;  %v141_v23 = vsel %vm71_vm0, %v117_v11, -inf }
  0x2c   :  { %v75_v24 = vrot.slane %v74_v16, 2  ;;  %v81_v25 = vmax.f32 %v79_v12, %v80_v17  ;;  %v89_v26 = vrot.slane %v88_v18, 2  ;;  %v95_v27 = vmax.f32 %v93_v13, %v94_v19  ;;  %p429_p5 = por %p428_p4, %p427_p3 }
  0x2d   :  { %v122_v28 = vmax.f32 %v120_v14, %v121_v20  ;;  %v128_v29 = vrot.slane %v127_v21, 4  ;;  %v136_v30 = vmax.f32 %v134_v15, %v135_v22  ;;  %v142_v31 = vrot.slane %v141_v23, 4 }
  0x2e   :  { %v76_v32 = vmax.f32 %v74_v16, %v75_v24  ;;  %v82_v33 = vrot.slane %v81_v25, 2  ;;  %v90_v34 = vmax.f32 %v88_v18, %v89_v26  ;;  %v96_v35 = vrot.slane %v95_v27, 2  ;;  %p430_p6 = pnand %p429_p5, %p423_p2 }
  0x2f   :  { %v123_v36 = vrot.slane %v122_v28, 2  ;;  %v129_v37 = vmax.f32 %v127_v21, %v128_v29  ;;  %v137_v38 = vrot.slane %v136_v30, 2  ;;  %v143_v39 = vmax.f32 %v141_v23, %v142_v31 }
  0x30   :  { %v77_v40 = vrot.slane %v76_v32, 1  ;;  %v83_v41 = vmax.f32 %v81_v25, %v82_v33  ;;  %v91_v42 = vrot.slane %v90_v34, 1  ;;  %v97_v43 = vmax.f32 %v95_v27, %v96_v35 }
  0x31   :  { %v124_v44 = vmax.f32 %v122_v28, %v123_v36  ;;  %v130_v45 = vrot.slane %v129_v37, 2  ;;  %v138_v46 = vmax.f32 %v136_v30, %v137_v38  ;;  %v144_v47 = vrot.slane %v143_v39, 2 }
  0x32   :  { %v78_v48 = vmax.f32 %v76_v32, %v77_v40  ;;  %v84_v49 = vrot.slane %v83_v41, 1  ;;  %v92_v50 = vmax.f32 %v90_v34, %v91_v42  ;;  %v98_v51 = vrot.slane %v97_v43, 1 }
  0x33   :  { %v125_v52 = vrot.slane %v124_v44, 1  ;;  %v131_v53 = vmax.f32 %v129_v37, %v130_v45  ;;  %v139_v54 = vrot.slane %v138_v46, 1  ;;  %v145_v55 = vmax.f32 %v143_v39, %v144_v47 }
  0x34   :  { %v85_v56 = vmax.f32 %v83_v41, %v84_v49  ;;  %v99_v57 = vmax.f32 %v97_v43, %v98_v51  ;;  %vm324_vm1 = vcmask 0  }
  0x35   :  { %v126_v58 = vmax.f32 %v124_v44, %v125_v52  ;;  %v132_v59 = vrot.slane %v131_v53, 1  ;;  %v140_v60 = vmax.f32 %v138_v46, %v139_v54  ;;  %v146_v61 = vrot.slane %v145_v55, 1 }
  0x36   :  { %v104_v62 = vcombine.low %v78_v48, %v85_v56  ;;  %v105_v63 = vcombine.low %v92_v50, %v99_v57 }
  0x37   :  { %v133_v4 = vmax.f32 %v131_v53, %v132_v59  ;;  %v147_v5 = vmax.f32 %v145_v55, %v146_v61 }
  0x38   :  { %v108_v6 = vsub.f32 %v494_v0, %v104_v62  ;;  %v109_v7 = vsub.f32 %v496_v1, %v105_v63 }
  0x39   :  { %v152_v8 = vcombine.low %v126_v58, %v133_v4  ;;  %v153_v9 = vcombine.low %v140_v60, %v147_v5 }
  0x3a   :  { %v110_v10 = vmul.f32 1.442695, %v108_v6  ;;  %v112_v11 = vmul.f32 1.442695, %v109_v7 }
  0x3b   :  { %v156_v12 = vsub.f32 %v498_v2, %v152_v8  ;;  %v157_v13 = vsub.f32 %v500_v3, %v153_v9 }
  0x3c   :  { %354 = vpow2.f32 %v110_v10 }
  0x3d   :  { %356 = vpow2.f32 %v112_v11  ;;  %v158_v14 = vmul.f32 1.442695, %v156_v12  ;;  %v160_v15 = vmul.f32 1.442695, %v157_v13 }
  0x3f   :  { %358 = vpow2.f32 %v158_v14 }
  0x40   :  { %360 = vpow2.f32 %v160_v15 }
  0x46   :  { %v526_v16 = vpop.eup %354 }
  0x47   :  { %v528_v17 = vpop.eup %356  ;;  %v164_v0 = vcombine.high %v526_v16, %v526_v16  ;;  %v168_v1 = vsel %vm71_vm0, %v526_v16, 0.0 }
  0x48   :  { %v165_v2 = vcombine.high %v528_v17, %v528_v17  ;;  %v169_v3 = vrot.slane %v168_v1, 4  ;;  %v182_v18 = vsel %vm71_vm0, %v528_v17, 0.0 }
  0x49   :  { %v538_v19 = vpop.eup %358  ;;  %v175_v20 = vsel %vm71_vm0, %v164_v0, 0.0  ;;  %v183_v21 = vrot.slane %v182_v18, 4 }
  0x4a   :  { %v541_v22 = vpop.eup %360  ;;  %v170_v23 = vadd.f32 %v169_v3, %v168_v1  ;;  %v176_v24 = vrot.slane %v175_v20, 4  ;;  %v189_v25 = vsel %vm71_vm0, %v165_v2, 0.0  ;;  %v224_v26 = vcombine.high %v538_v19, %v538_v19 }
  0x4b   :  { %v184_v27 = vadd.f32 %v183_v21, %v182_v18  ;;  %v190_v28 = vrot.slane %v189_v25, 4  ;;  %v225_v29 = vcombine.high %v541_v22, %v541_v22  ;;  %v228_v30 = vsel %vm71_vm0, %v538_v19, 0.0 }
  0x4c   :  { %v171_v31 = vrot.slane %v170_v23, 2  ;;  %v177_v32 = vadd.f32 %v176_v24, %v175_v20  ;;  %v229_v33 = vrot.slane %v228_v30, 4  ;;  %v235_v34 = vsel %vm71_vm0, %v224_v26, 0.0 }
  0x4d   :  { %v185_v35 = vrot.slane %v184_v27, 2  ;;  %v191_v36 = vadd.f32 %v190_v28, %v189_v25  ;;  %v236_v37 = vrot.slane %v235_v34, 4  ;;  %v242_v38 = vsel %vm71_vm0, %v541_v22, 0.0 }
  0x4e   :  { %v172_v39 = vadd.f32 %v171_v31, %v170_v23  ;;  %v178_v40 = vrot.slane %v177_v32, 2  ;;  %v230_v41 = vadd.f32 %v229_v33, %v228_v30  ;;  %v243_v42 = vrot.slane %v242_v38, 4 }
  0x4f   :  { %v186_v43 = vadd.f32 %v185_v35, %v184_v27  ;;  %v192_v44 = vrot.slane %v191_v36, 2  ;;  %v237_v45 = vadd.f32 %v236_v37, %v235_v34  ;;  %v249_v46 = vsel %vm71_vm0, %v225_v29, 0.0 }
  0x50   :  { %v173_v47 = vrot.slane %v172_v39, 1  ;;  %v179_v48 = vadd.f32 %v178_v40, %v177_v32  ;;  %v231_v49 = vrot.slane %v230_v41, 2  ;;  %v244_v50 = vadd.f32 %v243_v42, %v242_v38 }
  0x51   :  { %v187_v51 = vrot.slane %v186_v43, 1  ;;  %v193_v52 = vadd.f32 %v192_v44, %v191_v36  ;;  %v238_v53 = vrot.slane %v237_v45, 2  ;;  %v250_v54 = vrot.slane %v249_v46, 4 }
  0x52   :  { %v174_v55 = vadd.f32 %v173_v47, %v172_v39  ;;  %v180_v56 = vrot.slane %v179_v48, 1  ;;  %v232_v57 = vadd.f32 %v231_v49, %v230_v41  ;;  %v245_v58 = vrot.slane %v244_v50, 2 }
  0x53   :  { %v188_v59 = vadd.f32 %v187_v51, %v186_v43  ;;  %v194_v60 = vrot.slane %v193_v52, 1  ;;  %v239_v61 = vadd.f32 %v238_v53, %v237_v45  ;;  %v251_v62 = vadd.f32 %v250_v54, %v249_v46 }
  0x54   :  { %v181_v63 = vadd.f32 %v180_v56, %v179_v48  ;;  %362 = vrcp.f32 %v174_v55  ;;  %v233_v4 = vrot.slane %v232_v57, 1  ;;  %v246_v5 = vadd.f32 %v245_v58, %v244_v50 }
  0x55   :  { %v195_v6 = vadd.f32 %v194_v60, %v193_v52  ;;  %364 = vrcp.f32 %v188_v59  ;;  %v240_v7 = vrot.slane %v239_v61, 1  ;;  %v252_v8 = vrot.slane %v251_v62, 2 }
  0x56   :  { %366 = vrcp.f32 %v181_v63  ;;  %v234_v9 = vadd.f32 %v233_v4, %v232_v57  ;;  %v247_v10 = vrot.slane %v246_v5, 1 }
  0x57   :  { %368 = vrcp.f32 %v195_v6  ;;  %v241_v11 = vadd.f32 %v240_v7, %v239_v61  ;;  %v253_v12 = vadd.f32 %v252_v8, %v251_v62 }
  0x58   :  { %v248_v13 = vadd.f32 %v247_v10, %v246_v5  ;;  %370 = vrcp.f32 %v234_v9 }
  0x59   :  { %v254_v14 = vrot.slane %v253_v12, 1  ;;  %372 = vrcp.f32 %v241_v11 }
  0x5a   :  { %374 = vrcp.f32 %v248_v13 }
  0x5b   :  { %v255_v15 = vadd.f32 %v254_v14, %v253_v12 }
  0x5d   :  { %376 = vrcp.f32 %v255_v15 }
  0x5e   :  { %v363_v0 = vpop.eup %362 }
  0x5f   :  { %v365_v1 = vpop.eup %364  ;;  %v200_v2 = vmul.f32 %v363_v0, %v174_v55 }
  0x60   :  { %v367_v3 = vpop.eup %366  ;;  %v202_v18 = vmul.f32 %v365_v1, %v188_v59 }
  0x61   :  { %v369_v20 = vpop.eup %368  ;;  %v201_v21 = vmul.f32 %v367_v3, %v181_v63  ;;  %v204_v23 = vsub.f32 2.0, %v200_v2 }
  0x62   :  { %v371_v24 = vpop.eup %370  ;;  %v203_v25 = vmul.f32 %v369_v20, %v195_v6  ;;  %v206_v26 = vsub.f32 2.0, %v202_v18 }
  0x63   :  { %v373_v27 = vpop.eup %372  ;;  %v205_v28 = vsub.f32 2.0, %v201_v21  ;;  %v208_v29 = vmul.f32 %v363_v0, %v204_v23  ;;  %v260_v30 = vmul.f32 %v371_v24, %v234_v9 }
  0x64   :  { %v375_v31 = vpop.eup %374  ;;  %v207_v32 = vsub.f32 2.0, %v203_v25  ;;  %v261_v33 = vmul.f32 %v373_v27, %v241_v11  ;;  %v210_v35 = vmul.f32 %v365_v1, %v206_v26 }
  0x65   :  { %v209_v34 = vmul.f32 %v367_v3, %v205_v28  ;;  %v262_v36 = vmul.f32 %v375_v31, %v248_v13  ;;  %v264_v37 = vsub.f32 2.0, %v260_v30 }
  0x66   :  { %v211_v38 = vmul.f32 %v369_v20, %v207_v32  ;;  %v265_v39 = vsub.f32 2.0, %v261_v33 }
  0x67   :  { %v377_v40 = vpop.eup %376  ;;  %v216_v41 = vcombine.low %v208_v29, %v209_v34  ;;  %v266_v42 = vsub.f32 2.0, %v262_v36  ;;  %v268_v43 = vmul.f32 %v371_v24, %v264_v37 }
  0x68   :  { %v263_v44 = vmul.f32 %v377_v40, %v255_v15  ;;  %v269_v45 = vmul.f32 %v373_v27, %v265_v39  ;;  %v217_v46 = vcombine.low %v210_v35, %v211_v38 }
  0x69   :  { %v220_v47 = vmul.f32 %v526_v16, %v216_v41  ;;  %v270_v49 = vmul.f32 %v375_v31, %v266_v42 }
  0x6a   :  { %v267_v48 = vsub.f32 2.0, %v263_v44  ;;  %v276_v50 = vcombine.low %v268_v43, %v269_v45  ;;  %v221_v53 = vmul.f32 %v528_v17, %v217_v46 }
  0x6c   :  { %v271_v51 = vmul.f32 %v377_v40, %v267_v48  ;;  %v280_v52 = vmul.f32 %v538_v19, %v276_v50 }
  0x6e   :  { %v277_v54 = vcombine.low %v270_v49, %v271_v51  ;;  %v282_v55 = vsub.f32 %v220_v47, %v280_v52 }
  0x70   :  { %v281_v56 = vmul.f32 %v541_v22, %v277_v54  ;;  %v284_v57 = vmul.f32 %v282_v55, %v282_v55 }
  0x72   :  { %v283_v58 = vsub.f32 %v221_v53, %v281_v56  ;;  %v288_v59 = vcombine.high %v284_v57, %v284_v57  ;;  %v292_v61 = vsel %vm71_vm0, %v284_v57, 0.0 }
  0x74   :  { %v285_v60 = vmul.f32 %v283_v58, %v283_v58  ;;  %v295_v63 = vsel %vm71_vm0, %v288_v59, 0.0 }
  0x76   :  { %v289_v62 = vcombine.high %v285_v60, %v285_v60  ;;  %v293_v16 = vsel %vm71_vm0, %v285_v60, 0.0 }
  0x77   :  { %v294_v4 = vadd.f32 %v293_v16, %v292_v61 }
  0x78   :  { %v296_v19 = vsel %vm71_vm0, %v289_v62, 0.0 }
  0x79   :  { %v297_v5 = vadd.f32 %v296_v19, %v295_v63 }
  0x7b   :  { %v301_v17 = vcombine.low %v294_v4, %v297_v5  ;;  %v342_v6 = vcombine.low %v297_v5, %v297_v5 }
  0x7d   :  { %v311_v7 = vsel %vm71_vm0, %v301_v17, 0.0  ;;  %v312_v22 = vsel %vm71_vm0, %v342_v6, 0.0 }
  0x7e   :  { %v313_v8 = vadd.f32 %v312_v22, %v311_v7 }
  0x80   :  { %314 = vadd.xlane.f32.xlu0 %v313_v8 }
 0x10d   :  { %v315_v9 = vpop.xlane.xlu0 %314 }
 0x10e   :  { %v316_v10 = vrot.slane %v315_v9, 4 }
 0x110   :  { %v317_v11 = vadd.f32 %v316_v10, %v315_v9 }
 0x112   :  { %v318_v12 = vrot.slane %v317_v11, 2 }
 0x114   :  { %v319_v13 = vadd.f32 %v318_v12, %v317_v11 }
 0x116   :  { %v320_v14 = vrot.slane %v319_v13, 1 }
 0x118   :  { %v321_v15 = vadd.f32 %v320_v14, %v319_v13 }
 0x11a   :  { %343 = vpush %v321_v15 }
 0x14b   :  { %s344_s7 = spop %343 }
 0x14c   :  { %v323_v0 = vstv %s344_s7 }
 0x14d   :  { %325 = vst.msk [vmem:[#allocation8] sm:$0x1] %vm324_vm1, %v323_v0 }
 0x14e   :  { %433 = shalt.err (!%p430_p6)
}
 0x14f   :  { %s434_s12 = scalar_lea.hbm %s578_s2, 16 }
 0x150   :  { %p435_p7 = scmp.ne.s32.totalorder %s578_s2, %s434_s12  ;;  %p438_p8 = scmp.lt.u32.totalorder %s434_s12, %s578_s2 }
 0x152   :  { %p440_p9 = pnand %p438_p8, %p435_p7 }
 0x154   :  { %443 = shalt.err (!%p440_p9)
}
 0x155   :  { %335 = dma.vmem_to_hbm [thread:$0]  %s333_s6, 16, %s578_s2, [#allocation5]  }
 0x156   :  { %448 = dma.done.wait [#allocation5], 16  }
 0x157   :  { %449 = vsyncadd [#allocation5], 4294967280 }
 0x158   :  { %339 = vsyncpa [#allocation4], 1 }
 0x159   :  { %340 = vsyncpa [#allocation7], 1 }
 0x15a   :  { %341 = vsyncpa [#allocation5], 1 }

</bundles_post_ra>
